<compile_context>
chip_gen: v5e
topology: v5e:2x2
jax: 0.10.0
libtpu: 0.0.40
codegen_flags: <defaults>
</compile_context>

<pallas_src>
import functools

import jax
import jax.numpy as jnp
from jax.experimental import pallas as pl
from jax.experimental.pallas import tpu as pltpu

EMBED_DIM = 32
NUM_HEADS = 4
HEAD_DIM = EMBED_DIM // NUM_HEADS
TGT_LEN = 8
BSZ = 2


# ---------------------------------------------------------------------------
# Kernel: one grid step == one sequence position t
# ---------------------------------------------------------------------------
def _hydra_kernel(x_ref, w_ref, b_ref, o_ref, *, num_heads, head_dim, bsz, embed_dim):
    """
    x_ref: (1, B, E)   this position's activations, all batches
    w_ref: (E, 4E)     [wq^T | wk^T | wv^T | wo^T]   (4E == 128 lanes here: lane-dense)
    b_ref: (1, 4E)     [bq   | bk   | bv   | bo  ]
    o_ref: (1, B, E)   t-major output block (wrapper transposes to (B, T, E))
    """
    f32 = jnp.float32
    E, hd, B, H = embed_dim, head_dim, bsz, num_heads
    scale = 1.0 / (hd ** 0.5)

    x = x_ref[0]                                                        # (B, E)

    # --- fused qkv projection: ONE (B,E)x(E,3E) MXU op ---
    qkv = jnp.dot(x, w_ref[:, :3 * E], preferred_element_type=f32) + b_ref[:, :3 * E]

    # --- joint (bsz*heads) axis via static lane slices + sublane concat (no matmuls) ---
    # Joint ordering is h-major (row h*B + b); attention over the joint axis is
    # permutation-equivariant, and the out projection below uses the same ordering.
    qj = jnp.concatenate([qkv[:, h * hd:(h + 1) * hd] for h in range(H)], axis=0)           # (B*H, hd)
    kj = jnp.concatenate([qkv[:, E + h * hd:E + (h + 1) * hd] for h in range(H)], axis=0)
    vj = jnp.concatenate([qkv[:, 2 * E + h * hd:2 * E + (h + 1) * hd] for h in range(H)], axis=0)

    # L2-normalize rows (EUP rsqrt); fold the 1/sqrt(head_dim) score scale into q.
    # No epsilon: an all-zero row yields NaN, faithful to the PyTorch reference.
    qj = qj * (jax.lax.rsqrt(jnp.sum(qj * qj, axis=-1, keepdims=True)) * scale)
    kj = kj * jax.lax.rsqrt(jnp.sum(kj * kj, axis=-1, keepdims=True))

    # --- exact per-position attention: ONE joint score matmul + ONE PV matmul ---
    s = jax.lax.dot_general(qj, kj, (((1,), (1,)), ((), ())),
                            preferred_element_type=f32)                 # (B*H, B*H), NT
    # q rows have norm 1/sqrt(hd), k rows norm 1 -> |s| <= 1/sqrt(hd): exp cannot
    # overflow, so no max-subtraction is needed.
    e = jnp.exp(s)
    denom = jnp.sum(e, axis=-1, keepdims=True)                          # (B*H, 1)
    # TODO(synk): nn.Dropout(p=0.0) is the identity; no RNG/dropout path implemented.
    ws = jnp.dot(e, vj, preferred_element_type=f32) / denom             # (B*H, hd)

    # --- out projection with the head merge folded in: o = bo + sum_h ws_h @ wo_h ---
    wo_t = w_ref[:, 3 * E:]                                             # (E, E)
    o = jnp.zeros((B, E), f32) + b_ref[:, 3 * E:]                       # bias broadcast
    for h in range(H):
        o = o + jnp.dot(ws[h * B:(h + 1) * B, :], wo_t[h * hd:(h + 1) * hd, :],
                        preferred_element_type=f32)
    o_ref[0] = o


# ---------------------------------------------------------------------------
# Wrapper: parameter packing + grid setup (all plumbing, no compute)
# ---------------------------------------------------------------------------
def pallas_hydra_attention(query, w_qkv, b_qkv, w_out, b_out, num_heads=NUM_HEADS):
    tgt_len, bsz, embed_dim = query.shape
    head_dim = embed_dim // num_heads

    # nn.Linear weights are (out, in); pre-transpose and pack everything into one
    # lane-dense (E, 4E) weight slab and one (1, 4E) bias row -> 3 DMAs instead of 10.
    w_pack = jnp.concatenate(
        [w_qkv[0 * embed_dim:1 * embed_dim].T,
         w_qkv[1 * embed_dim:2 * embed_dim].T,
         w_qkv[2 * embed_dim:3 * embed_dim].T,
         w_out.T], axis=1)                                              # (E, 4E)
    b_pack = jnp.concatenate([b_qkv, b_out]).reshape(1, -1)             # (1, 4E)

    kern = functools.partial(_hydra_kernel, num_heads=num_heads, head_dim=head_dim,
                             bsz=bsz, embed_dim=embed_dim)

    # Grid over positions ("parallel": independent per-t work, shardable across v7x's
    # two TensorCores).  Weight/bias block indices are constant across the grid, so
    # they are DMA'd into VMEM once and revisited.
    out_tbe = pl.pallas_call(
        kern,
        grid=(tgt_len,),
        in_specs=[
            pl.BlockSpec((1, bsz, embed_dim), lambda t: (t, 0, 0)),
            pl.BlockSpec((embed_dim, 4 * embed_dim), lambda t: (0, 0)),
            pl.BlockSpec((1, 4 * embed_dim), lambda t: (0, 0)),
        ],
        out_specs=pl.BlockSpec((1, bsz, embed_dim), lambda t: (t, 0, 0)),
        out_shape=jax.ShapeDtypeStruct((tgt_len, bsz, embed_dim), jnp.float32),
        compiler_params=pltpu.CompilerParams(dimension_semantics=("parallel",)),
    )(query, w_pack, b_pack)

    # (T, B, E) -> (B, T, E): a ~2 KB transpose, free in XLA outside the kernel.
    return jnp.transpose(out_tbe, (1, 0, 2))


# ---------------------------------------------------------------------------
# Pure-JAX reference (mirror of the PyTorch forward) for correctness check
# ---------------------------------------------------------------------------
def hydra_attention_ref(query, w_qkv, b_qkv, w_out, b_out, num_heads=NUM_HEADS):
    tgt_len, bsz, embed_dim = query.shape
    head_dim = embed_dim // num_heads
    qkv = query @ w_qkv.T + b_qkv
    q, k, v = jnp.split(qkv, 3, axis=-1)
    q = q.reshape(tgt_len, bsz * num_heads, head_dim)
    k = k.reshape(tgt_len, bsz * num_heads, head_dim)
    v = v.reshape(tgt_len, bsz * num_heads, head_dim)
    q = q / jnp.linalg.norm(q, axis=-1, keepdims=True)
    k = k / jnp.linalg.norm(k, axis=-1, keepdims=True)
    scores = jnp.einsum('tid,tjd->tij', q, k) / (head_dim ** 0.5)
    probs = jax.nn.softmax(scores, axis=-1)
    ws = jnp.einsum('tij,tjd->tid', probs, v)
    ws = ws.reshape(tgt_len, bsz, num_heads, head_dim)
    ws = jnp.transpose(ws, (1, 0, 2, 3)).reshape(bsz, tgt_len, embed_dim)
    return ws @ w_out.T + b_out


if __name__ == "__main__":
    key = jax.random.PRNGKey(0)
    k_q, k_wqkv, k_bqkv, k_wout, k_bout = jax.random.split(key, 5)

    # Deterministic synthetic parameters (nn.Linear shapes: (out, in) weights).
    query = jax.random.normal(k_q, (TGT_LEN, BSZ, EMBED_DIM), jnp.float32)
    w_qkv = jax.random.normal(k_wqkv, (3 * EMBED_DIM, EMBED_DIM), jnp.float32) * 0.1
    b_qkv = jax.random.normal(k_bqkv, (3 * EMBED_DIM,), jnp.float32) * 0.1
    w_out = jax.random.normal(k_wout, (EMBED_DIM, EMBED_DIM), jnp.float32) * 0.1
    b_out = jax.random.normal(k_bout, (EMBED_DIM,), jnp.float32) * 0.1

    out = jax.jit(pallas_hydra_attention)(query, w_qkv, b_qkv, w_out, b_out)
    out = jax.block_until_ready(out)

    ref = hydra_attention_ref(query, w_qkv, b_qkv, w_out, b_out)
    assert out.shape == (BSZ, TGT_LEN, EMBED_DIM), out.shape
    # Everything is f32 with an exact softmax divide now; only op-ordering rounding remains.
    max_err = float(jnp.max(jnp.abs(out - ref)))
    assert jnp.allclose(out, ref, rtol=1e-4, atol=1e-4), max_err

    print("KERNEL_OK")
</pallas_src>

<mosaic_0001>
module attributes {stable_mosaic.version = 11 : i64} {
  func.func @_hydra_kernel(%arg0: i32, %arg1: memref<1x2x32xf32, #tpu.memory_space<vmem>>, %arg2: memref<32x128xf32, #tpu.memory_space<vmem>>, %arg3: memref<1x128xf32, #tpu.memory_space<vmem>>, %arg4: memref<1x2x32xf32, #tpu.memory_space<vmem>>) attributes {dimension_semantics = [#tpu.dimension_semantics<parallel>], iteration_bounds = array<i64: 8>, scalar_prefetch = 0 : i64, scratch_operands = 0 : i64, tpu.core_type = #tpu.core_type<tc>, window_params = [{transform_indices = @transform_0, window_bounds = array<i64: 1, 2, 32>}, {pipeline_mode = #tpu.pipeline_mode<synchronous>, transform_indices = @transform_1, window_bounds = array<i64: 32, 128>}, {pipeline_mode = #tpu.pipeline_mode<synchronous>, transform_indices = @transform_2, window_bounds = array<i64: 1, 128>}, {transform_indices = @transform_3, window_bounds = array<i64: 1, 2, 32>}]} {
    %c0 = arith.constant 0 : index
    %c0_0 = arith.constant 0 : index
    %c0_1 = arith.constant 0 : index
    %0 = vector.load %arg1[%c0, %c0_0, %c0_1] : memref<1x2x32xf32, #tpu.memory_space<vmem>>, vector<1x2x32xf32>
    %1 = vector.shape_cast %0 : vector<1x2x32xf32> to vector<2x32xf32>
    %c0_2 = arith.constant 0 : index
    %c0_3 = arith.constant 0 : index
    %2 = vector.load %arg2[%c0_2, %c0_3] : memref<32x128xf32, #tpu.memory_space<vmem>>, vector<32x96xf32>
    %cst = arith.constant dense<0.000000e+00> : vector<2x96xf32>
    %3 = tpu.matmul %1, %2, %cst {dimension_numbers = #tpu.dot_dimension_numbers<[1], [0], [0], [1], [0, 0, 1, 1], [], []>} : vector<2x32xf32>, vector<32x96xf32>, vector<2x96xf32> -> vector<2x96xf32>
    %c0_4 = arith.constant 0 : index
    %c0_5 = arith.constant 0 : index
    %4 = vector.load %arg3[%c0_4, %c0_5] : memref<1x128xf32, #tpu.memory_space<vmem>>, vector<1x96xf32>
    %5 = vector.broadcast %4 : vector<1x96xf32> to vector<2x96xf32>
    %6 = arith.addf %3, %5 : vector<2x96xf32>
    %7 = vector.extract_strided_slice %6 {offsets = [0, 0], sizes = [2, 8], strides = [1, 1]} : vector<2x96xf32> to vector<2x8xf32>
    %8 = vector.extract_strided_slice %6 {offsets = [0, 8], sizes = [2, 8], strides = [1, 1]} : vector<2x96xf32> to vector<2x8xf32>
    %9 = vector.extract_strided_slice %6 {offsets = [0, 16], sizes = [2, 8], strides = [1, 1]} : vector<2x96xf32> to vector<2x8xf32>
    %10 = vector.extract_strided_slice %6 {offsets = [0, 24], sizes = [2, 8], strides = [1, 1]} : vector<2x96xf32> to vector<2x8xf32>
    %11 = tpu.concatenate %7, %8, %9, %10 in 0 : vector<2x8xf32>, vector<2x8xf32>, vector<2x8xf32>, vector<2x8xf32> -> vector<8x8xf32>
    %12 = vector.extract_strided_slice %6 {offsets = [0, 32], sizes = [2, 8], strides = [1, 1]} : vector<2x96xf32> to vector<2x8xf32>
    %13 = vector.extract_strided_slice %6 {offsets = [0, 40], sizes = [2, 8], strides = [1, 1]} : vector<2x96xf32> to vector<2x8xf32>
    %14 = vector.extract_strided_slice %6 {offsets = [0, 48], sizes = [2, 8], strides = [1, 1]} : vector<2x96xf32> to vector<2x8xf32>
    %15 = vector.extract_strided_slice %6 {offsets = [0, 56], sizes = [2, 8], strides = [1, 1]} : vector<2x96xf32> to vector<2x8xf32>
    %16 = tpu.concatenate %12, %13, %14, %15 in 0 : vector<2x8xf32>, vector<2x8xf32>, vector<2x8xf32>, vector<2x8xf32> -> vector<8x8xf32>
    %17 = vector.extract_strided_slice %6 {offsets = [0, 64], sizes = [2, 8], strides = [1, 1]} : vector<2x96xf32> to vector<2x8xf32>
    %18 = vector.extract_strided_slice %6 {offsets = [0, 72], sizes = [2, 8], strides = [1, 1]} : vector<2x96xf32> to vector<2x8xf32>
    %19 = vector.extract_strided_slice %6 {offsets = [0, 80], sizes = [2, 8], strides = [1, 1]} : vector<2x96xf32> to vector<2x8xf32>
    %20 = vector.extract_strided_slice %6 {offsets = [0, 88], sizes = [2, 8], strides = [1, 1]} : vector<2x96xf32> to vector<2x8xf32>
    %21 = tpu.concatenate %17, %18, %19, %20 in 0 : vector<2x8xf32>, vector<2x8xf32>, vector<2x8xf32>, vector<2x8xf32> -> vector<8x8xf32>
    %22 = arith.mulf %11, %11 : vector<8x8xf32>
    %cst_6 = arith.constant dense<0.000000e+00> : vector<8xf32>
    %23 = vector.multi_reduction <add>, %22, %cst_6 [1] : vector<8x8xf32> to vector<8xf32>
    %24 = vector.shape_cast %23 : vector<8xf32> to vector<8x1xf32>
    %25 = math.rsqrt %24 : vector<8x1xf32>
    %cst_7 = arith.constant 0.353553385 : f32
    %26 = vector.broadcast %cst_7 : f32 to vector<8x1xf32>
    %27 = arith.mulf %25, %26 : vector<8x1xf32>
    %28 = vector.broadcast %27 : vector<8x1xf32> to vector<8x8xf32>
    %29 = arith.mulf %11, %28 : vector<8x8xf32>
    %30 = arith.mulf %16, %16 : vector<8x8xf32>
    %cst_8 = arith.constant dense<0.000000e+00> : vector<8xf32>
    %31 = vector.multi_reduction <add>, %30, %cst_8 [1] : vector<8x8xf32> to vector<8xf32>
    %32 = vector.shape_cast %31 : vector<8xf32> to vector<8x1xf32>
    %33 = math.rsqrt %32 : vector<8x1xf32>
    %34 = vector.broadcast %33 : vector<8x1xf32> to vector<8x8xf32>
    %35 = arith.mulf %16, %34 : vector<8x8xf32>
    %cst_9 = arith.constant dense<0.000000e+00> : vector<8x8xf32>
    %36 = tpu.matmul %29, %35, %cst_9 {dimension_numbers = #tpu.dot_dimension_numbers<[1], [1], [0], [0], [0, 0, 1, 0], [], []>} : vector<8x8xf32>, vector<8x8xf32>, vector<8x8xf32> -> vector<8x8xf32>
    %37 = math.exp %36 : vector<8x8xf32>
    %cst_10 = arith.constant dense<0.000000e+00> : vector<8xf32>
    %38 = vector.multi_reduction <add>, %37, %cst_10 [1] : vector<8x8xf32> to vector<8xf32>
    %39 = vector.shape_cast %38 : vector<8xf32> to vector<8x1xf32>
    %cst_11 = arith.constant dense<0.000000e+00> : vector<8x8xf32>
    %40 = tpu.matmul %37, %21, %cst_11 {dimension_numbers = #tpu.dot_dimension_numbers<[1], [0], [0], [1], [0, 0, 1, 1], [], []>} : vector<8x8xf32>, vector<8x8xf32>, vector<8x8xf32> -> vector<8x8xf32>
    %41 = vector.broadcast %39 : vector<8x1xf32> to vector<8x8xf32>
    %42 = arith.divf %40, %41 : vector<8x8xf32>
    %c0_12 = arith.constant 0 : index
    %c96 = arith.constant 96 : index
    %43 = vector.load %arg2[%c0_12, %c96] : memref<32x128xf32, #tpu.memory_space<vmem>>, vector<32x32xf32>
    %cst_13 = arith.constant 0.000000e+00 : f32
    %44 = vector.broadcast %cst_13 : f32 to vector<2x32xf32>
    %c0_14 = arith.constant 0 : index
    %c96_15 = arith.constant 96 : index
    %45 = vector.load %arg3[%c0_14, %c96_15] : memref<1x128xf32, #tpu.memory_space<vmem>>, vector<1x32xf32>
    %46 = vector.broadcast %45 : vector<1x32xf32> to vector<2x32xf32>
    %47 = arith.addf %44, %46 : vector<2x32xf32>
    %48 = vector.extract_strided_slice %42 {offsets = [0, 0], sizes = [2, 8], strides = [1, 1]} : vector<8x8xf32> to vector<2x8xf32>
    %49 = vector.extract_strided_slice %43 {offsets = [0, 0], sizes = [8, 32], strides = [1, 1]} : vector<32x32xf32> to vector<8x32xf32>
    %cst_16 = arith.constant dense<0.000000e+00> : vector<2x32xf32>
    %50 = tpu.matmul %48, %49, %cst_16 {dimension_numbers = #tpu.dot_dimension_numbers<[1], [0], [0], [1], [0, 0, 1, 1], [], []>} : vector<2x8xf32>, vector<8x32xf32>, vector<2x32xf32> -> vector<2x32xf32>
    %51 = arith.addf %47, %50 : vector<2x32xf32>
    %52 = vector.extract_strided_slice %42 {offsets = [2, 0], sizes = [2, 8], strides = [1, 1]} : vector<8x8xf32> to vector<2x8xf32>
    %53 = vector.extract_strided_slice %43 {offsets = [8, 0], sizes = [8, 32], strides = [1, 1]} : vector<32x32xf32> to vector<8x32xf32>
    %cst_17 = arith.constant dense<0.000000e+00> : vector<2x32xf32>
    %54 = tpu.matmul %52, %53, %cst_17 {dimension_numbers = #tpu.dot_dimension_numbers<[1], [0], [0], [1], [0, 0, 1, 1], [], []>} : vector<2x8xf32>, vector<8x32xf32>, vector<2x32xf32> -> vector<2x32xf32>
    %55 = arith.addf %51, %54 : vector<2x32xf32>
    %56 = vector.extract_strided_slice %42 {offsets = [4, 0], sizes = [2, 8], strides = [1, 1]} : vector<8x8xf32> to vector<2x8xf32>
    %57 = vector.extract_strided_slice %43 {offsets = [16, 0], sizes = [8, 32], strides = [1, 1]} : vector<32x32xf32> to vector<8x32xf32>
    %cst_18 = arith.constant dense<0.000000e+00> : vector<2x32xf32>
    %58 = tpu.matmul %56, %57, %cst_18 {dimension_numbers = #tpu.dot_dimension_numbers<[1], [0], [0], [1], [0, 0, 1, 1], [], []>} : vector<2x8xf32>, vector<8x32xf32>, vector<2x32xf32> -> vector<2x32xf32>
    %59 = arith.addf %55, %58 : vector<2x32xf32>
    %60 = vector.extract_strided_slice %42 {offsets = [6, 0], sizes = [2, 8], strides = [1, 1]} : vector<8x8xf32> to vector<2x8xf32>
    %61 = vector.extract_strided_slice %43 {offsets = [24, 0], sizes = [8, 32], strides = [1, 1]} : vector<32x32xf32> to vector<8x32xf32>
    %cst_19 = arith.constant dense<0.000000e+00> : vector<2x32xf32>
    %62 = tpu.matmul %60, %61, %cst_19 {dimension_numbers = #tpu.dot_dimension_numbers<[1], [0], [0], [1], [0, 0, 1, 1], [], []>} : vector<2x8xf32>, vector<8x32xf32>, vector<2x32xf32> -> vector<2x32xf32>
    %63 = arith.addf %59, %62 : vector<2x32xf32>
    %c0_20 = arith.constant 0 : index
    %c0_21 = arith.constant 0 : index
    %c0_22 = arith.constant 0 : index
    %64 = vector.load %arg4[%c0_20, %c0_21, %c0_22] : memref<1x2x32xf32, #tpu.memory_space<vmem>>, vector<1x2x32xf32>
    %65 = vector.shape_cast %64 : vector<1x2x32xf32> to vector<2x32xf32>
    %66 = vector.shape_cast %63 : vector<2x32xf32> to vector<1x2x32xf32>
    tpu.vector_store %arg4[%c0_20, %c0_21, %c0_22], %66 {strides = array<i32>} : memref<1x2x32xf32, #tpu.memory_space<vmem>>, vector<1x2x32xf32>,
    return
  }
  func.func @transform_0(%arg0: i32) -> (i32, i32, i32) {
    %c0_i32 = arith.constant 0 : i32
    %c0_i32_0 = arith.constant 0 : i32
    %c0_i32_1 = arith.constant 0 : i32
    return %arg0, %c0_i32, %c0_i32_0 : i32, i32, i32
  }
  func.func @transform_1(%arg0: i32) -> (i32, i32) {
    %c0_i32 = arith.constant 0 : i32
    %c0_i32_0 = arith.constant 0 : i32
    %c0_i32_1 = arith.constant 0 : i32
    return %c0_i32, %c0_i32_0 : i32, i32
  }
  func.func @transform_2(%arg0: i32) -> (i32, i32) {
    %c0_i32 = arith.constant 0 : i32
    %c0_i32_0 = arith.constant 0 : i32
    %c0_i32_1 = arith.constant 0 : i32
    return %c0_i32, %c0_i32_0 : i32, i32
  }
  func.func @transform_3(%arg0: i32) -> (i32, i32, i32) {
    %c0_i32 = arith.constant 0 : i32
    %c0_i32_0 = arith.constant 0 : i32
    %c0_i32_1 = arith.constant 0 : i32
    return %arg0, %c0_i32, %c0_i32_0 : i32, i32, i32
  }
}

</mosaic_0001>

<bundles_post_ra>
// kernel: pallas_hydra_attention.1
= control target key start
LH: loop header
LB: loop body
LE: loop exit
PB: predicated region body
PF: predicated region fallthrough
CT: control target
= control target key end

     0   :  { %s595_s12 = smov 0   ;;  %s677_s0 = inlined_call_operand.vmem [shape: f32[8,2,32], index: 0, kind: input, shape index: {}]   ;;  %s678_s1 = inlined_call_operand.vmem [shape: f32[32,128], index: 1, kind: input, shape index: {}]   ;;  %s679_s2 = inlined_call_operand.vmem [shape: f32[1,128], index: 2, kind: input, shape index: {}]   ;;  %s680_s3 = inlined_call_operand.vmem [shape: f32[8,2,32], index: 3, kind: output, shape index: {}]  }
   0x1 LB: > { %s516_s13 = sadd.s32 4294967295, %s567_s12   ;;  %p520_p0 = scmp.ge.s32.totalorder %s567_s12, 1  ;;  %s567_s12 = sphi %s595_s12, %s13_s12  }
   0x2   : > { %p136_p1 = scmp.lt.s32.totalorder %s567_s12, 9 }
   0x4   : > { %p137_p2 = pnand %p520_p0, %p136_p1 }
   0x5   : > { %p158_p3 = scmp.lt.s32.totalorder (!%p137_p2), %s516_s13, 7  ;;  %s569_s28 = smov (!%p137_p2), 104  }
   0x6   : > { %140 = sbr.rel (%p137_p2) target bundleno = 1292 (0x50c), region = 32  ;;  %s570_s29 = smov (!%p137_p2), 120  }
   0x7   : > { %s571_s30 = smov (!%p137_p2), 112   ;;  %s572_s4 = smov (!%p137_p2), 96  }
   0x8   : > { %s573_s5 = smov (!%p137_p2), 64   ;;  %s574_s6 = smov (!%p137_p2), 32  }
   0xb   : > { %v606_v0 = vld [vmem:[%s678_s1 + $0x18] sm:$0xff]  ;;  %v611_v1 = vld [vmem:[%s678_s1 + $0x10] sm:$0xff]  ;;  %v616_v2 = vld [vmem:[%s678_s1 + $0x8] sm:$0xff]  ;;  %s682_s13 = smov (!%p158_p3, %s516_s13), 7  ;;  %vm175_vm0 = vcmask 261120   ;;  %vm212_vm1 = vcmask 1041408  }
   0xc   : > { %191 = vmatpush.msra.mxu0 %v606_v0  ;;  %v547_v3 = vpack.i.bf16 %v611_v1, %v616_v2  ;;  %v627_v4 = vld [vmem:[%s678_s1] sm:$0xff]  ;;  %s521_s22 = sshll.u32 %s682_s13, 1  ;;  %vm214_vm2 = vcmask 1043456   ;;  %vm216_vm3 = vcmask 1045504   ;;  %vm219_vm4 = vcmask 64512  }
   0xd   : > { %s161_s25 = scalar_lea.vmem %s677_s0, %s521_s22  ;;  %v640_v6 = vld [vmem:[%s679_s2] ss:$0 sm:$0xff]  ;;  %s165_s9 = scalar_lea.vmem %s680_s3, %s521_s22  ;;  %vm461_vm15 = vcmask 254976  }
   0xe   : > { %192 = vmatpush.msra.mxu0 %v611_v1  ;;  %v166_v5 = vld [vmem:[%s161_s25] sm:$0x3] }
  0x10   : > { %193 = vmatpush.msra.mxu0 %v616_v2 }
  0x12   : > { %194 = vmatpush.msra.mxu0 %v627_v4 }
  0x13   : > { %523 = vmatmul.msk.f32.vlgmr.msra.gmra.mxu0 %vm175_vm0, %v166_v5 }
  0x90   : > { %v196_v7 = vpop.f32.mrf.mxu0 }
  0x91   : > { %v197_v8 = vadd.f32 %v640_v6, %v196_v7 }
  0x93   : > { %v208_v9 = vrot.slane %v197_v8, 2  ;;  %v200_v10 = vrot.slane %v197_v8, 6  ;;  %v204_v11 = vrot.slane %v197_v8, 4 }
  0x95   : > { %209 = vrot.lane.b32.xlu1 %v208_v9, %s569_s28  ;;  %201 = vrot.lane.b32.xlu0 %v200_v10, %s570_s29 }
  0x9d   : > { %205 = vrot.lane.b32.xlu0 %v204_v11, %s571_s30 }
 0x107   : > { %v202_v12 = vpop.permute.xlu0 %201  ;;  %v210_v15 = vpop.permute.xlu1 %209 }
 0x108   : > { %v213_v13 = vsel %vm212_vm1, %v197_v8, %v202_v12 }
 0x10f   : > { %v206_v14 = vpop.permute.xlu0 %205 }
 0x110   : > { %v215_v16 = vsel %vm214_vm2, %v213_v13, %v206_v14 }
 0x111   : > { %v217_v17 = vsel %vm216_vm3, %v215_v16, %v210_v15 }
 0x112   : > { %v218_v18 = vmul.f32 %v217_v17, %v217_v17 }
 0x114   : > { %236 = vrot.lane.b32.xlu1 %v218_v18, %s572_s4  ;;  %v220_v22 = vsel %vm219_vm4, %v218_v18, 0.0 }
 0x11c   : > { %287 = vrot.lane.b32.xlu1 %v217_v17, %s573_s5 }
 0x124   : > { %548 = vrot.lane.b32.xlu1 %v547_v3, %s574_s6 }
 0x186   : > { %v237_v19 = vpop.permute.xlu1 %236 }
 0x187   : > { %v239_v20 = vsel %vm219_vm4, %v237_v19, 0.0 }
 0x188   : > { %240 = vadd.xlane.f32.xlu2 %v239_v20 }
 0x18e   : > { %v288_v21 = vpop.permute.xlu1 %287 }
 0x18f   : > { %308 = vmatpush.msra.mxu2 %v288_v21 }
 0x190   : > { %221 = vadd.xlane.f32.xlu2 %v220_v22 }
 0x196   : > { %v549_v47 = vpop.permute.xlu1 %548 }
 0x197   : > { %v550_v49 = vunpack.i.l.bf16 %v549_v47  ;;  %v551_v50 = vunpack.i.h.bf16 %v549_v47 }
 0x199   : > { %383 = vmatpush.msrb.mxu2 %v550_v49 }
 0x1fb   : > { %v241_v23 = vpop.xlane.xlu2 %240 }
 0x1fc   : > { %553 = vrsqrt.f32 %v241_v23  ;;  %vm248_vm6 = vweird.f32 %v241_v23 }
 0x202   : > { %v554_v24 = vpop.eup %553 }
 0x203   : > { %v243_v25 = vmul.f32 %v554_v24, %v241_v23  ;;  %vm249_vm5 = vweird.f32 %v554_v24  ;;  %v222_v32 = vpop.xlane.xlu2 %221 }
 0x204   : > { %vm250_vm7 = vmor %vm248_vm6, %vm249_vm5  ;;  %555 = vrsqrt.f32 %v222_v32  ;;  %vm229_vm9 = vweird.f32 %v222_v32 }
 0x205   : > { %v244_v26 = vmul.f32 %v554_v24, %v243_v25 }
 0x207   : > { %v245_v27 = vmul.f32 0.5, %v244_v26 }
 0x209   : > { %v246_v28 = vsub.f32 1.5, %v245_v27 }
 0x20a   : > { %v556_v33 = vpop.eup %555 }
 0x20b   : > { %v247_v29 = vmul.f32 %v554_v24, %v246_v28  ;;  %v224_v34 = vmul.f32 %v556_v33, %v222_v32  ;;  %vm230_vm8 = vweird.f32 %v556_v33 }
 0x20c   : > { %vm231_vm10 = vmor %vm229_vm9, %vm230_vm8 }
 0x20d   : > { %v251_v30 = vsel %vm250_vm7, %v554_v24, %v247_v29  ;;  %v225_v35 = vmul.f32 %v556_v33, %v224_v34 }
 0x20e   : > { %v252_v31 = vmul.f32 %v251_v30, %v217_v17 }
 0x20f   : > { %v226_v36 = vmul.f32 0.5, %v225_v35 }
 0x210   : > { %254 = vrot.lane.b32.xlu0 %v252_v31, %s572_s4 }
 0x211   : > { %v227_v37 = vsub.f32 1.5, %v226_v36 }
 0x213   : > { %v228_v38 = vmul.f32 %v556_v33, %v227_v37 }
 0x215   : > { %v232_v39 = vsel %vm231_vm10, %v556_v33, %v228_v38 }
 0x216   : > { %v233_v40 = vmul.f32 0.35355338, %v232_v39 }
 0x218   : > { %v234_v42 = vmul.f32 %v233_v40, %v217_v17  ;;  %330 = vrot.lane.b32.xlu0 %v627_v4, %s574_s6 }
 0x282   : > { %v255_v41 = vpop.permute.xlu0 %254 }
 0x283   : > { %524 = vmatpush.xpose.msk.msra.mxu1 %vm219_vm4, %v255_v41 }
 0x286   : > { %525 = vmatmul.msk.f32.vlgmr.msra.gmra.mxu1 %vm219_vm4, %v234_v42 }
 0x28a   : > { %v331_v48 = vpop.permute.xlu0 %330 }
 0x28b   : > { %351 = vmatpush.msra.mxu3 %v331_v48 }
 0x28d   : > { %415 = vmatpush.msrb.mxu3 %v551_v50 }
 0x303   : > { %v278_v43 = vpop.f32.mrf.mxu1 }
 0x304   : > { %v281_v44 = vmul.f32 1.442695, %v278_v43 }
 0x306   : > { %557 = vpow2.f32 %v281_v44 }
 0x30c   : > { %v558_v45 = vpop.eup %557 }
 0x30d   : > { %526 = vmatmul.msk.f32.vlgmr.msra.gmra.mxu2 %vm219_vm4, %v558_v45  ;;  %v283_v46 = vsel %vm219_vm4, %v558_v45, 0.0 }
 0x30e   : > { %284 = vadd.xlane.f32.xlu2 %v283_v46 }
 0x326   : > { %427 = vrot.lane.b32.xlu2 %v606_v0, %s574_s6 }
 0x381   : > { %v285_v51 = vpop.xlane.xlu2 %284 }
 0x382   : > { %559 = vrcp.f32 %v285_v51  ;;  %v324_v56 = vand.u32 2147483648, %v285_v51  ;;  %v322_v58 = vand.u32 2147483647, %v285_v51  ;;  %vm318_vm12 = vweird.f32 %v285_v51 }
 0x384   : > { %v325_v60 = vor.u32 1.1754944e-38, %v324_v56  ;;  %vm323_vm14 = vcmp.eq.f32.partialorder %v322_v58, 8.507059e+37 }
 0x388   : > { %v560_v52 = vpop.eup %559 }
 0x389   : > { %v314_v53 = vmul.f32 %v560_v52, %v285_v51  ;;  %v428_v54 = vpop.permute.xlu2 %427  ;;  %vm319_vm11 = vweird.f32 %v560_v52 }
 0x38a   : > { %447 = vmatpush.msrb.mxu1 %v428_v54  ;;  %vm320_vm13 = vmor %vm318_vm12, %vm319_vm11 }
 0x38b   : > { %v315_v55 = vsub.f32 1.0, %v314_v53 }
 0x38d   : > { %v316_v57 = vmul.f32 %v560_v52, %v315_v55 }
 0x38f   : > { %v317_v59 = vadd.f32 %v560_v52, %v316_v57 }
 0x390   : > { %v310_v62 = vpop.f32.mrf.mxu2 }
 0x391   : > { %v321_v61 = vsel %vm320_vm13, %v560_v52, %v317_v59 }
 0x392   : > { %v326_v63 = vsel %vm323_vm14, %v325_v60, %v321_v61 }
 0x393   : > { %v327_v0 = vmul.f32 %v326_v63, %v310_v62 }
 0x395   : > { %527 = vmatmul.msk.f32.vlgmr.msra.gmra.mxu3 %vm219_vm4, %v327_v0  ;;  %v361_v1 = vrot.slane %v327_v0, 2  ;;  %v425_v2 = vrot.slane %v327_v0, 6  ;;  %v393_v3 = vrot.slane %v327_v0, 4 }
 0x397   : > { %528 = vmatmul.msk.f32.vlgmr.msrb.gmra.mxu2 %vm219_vm4, %v361_v1  ;;  %530 = vmatmul.msk.f32.vlgmr.msrb.gmra.mxu1 %vm219_vm4, %v425_v2 }
 0x39d   : > { %529 = vmatmul.msk.f32.vlgmr.msrb.gmra.mxu3 %vm219_vm4, %v393_v3 }
 0x414   : > { %v449_v8 = vpop.f32.mrf.mxu1 }
 0x418   : > { %v353_v4 = vpop.f32.mrf.mxu3 }
 0x419   : > { %357 = vrot.lane.b32.xlu0 %v353_v4, %s572_s4 }
 0x41a   : > { %v385_v5 = vpop.f32.mrf.mxu2 }
 0x41b   : > { %389 = vrot.lane.b32.xlu1 %v385_v5, %s572_s4 }
 0x420   : > { %v417_v7 = vpop.f32.mrf.mxu3 }
 0x421   : > { %421 = vrot.lane.b32.xlu0 %v417_v7, %s572_s4 }
 0x423   : > { %453 = vrot.lane.b32.xlu1 %v449_v8, %s572_s4 }
 0x48b   : > { %v358_v9 = vpop.permute.xlu0 %357 }
 0x48c   : > { %v360_v11 = vadd.f32 %v640_v6, %v358_v9 }
 0x48d   : > { %v390_v10 = vpop.permute.xlu1 %389 }
 0x48e   : > { %v392_v12 = vadd.f32 %v390_v10, %v360_v11 }
 0x493   : > { %v422_v13 = vpop.permute.xlu0 %421 }
 0x494   : > { %v424_v14 = vadd.f32 %v422_v13, %v392_v12 }
 0x495   : > { %v454_v15 = vpop.permute.xlu1 %453 }
 0x496   : > { %v456_v16 = vadd.f32 %v454_v15, %v424_v14 }
 0x498   : > { %458 = vrot.lane.b32.xlu0 %v456_v16, %s574_s6 }
 0x50a   : > { %v459_v17 = vpop.permute.xlu0 %458 }
 0x50b   : > { %462 = vst.msk [vmem:[%s165_s9] sm:$0x3] %vm461_vm15, %v459_v17 }
 0x50c PF: > { %s13_s12 = sadd.s32 1, %s567_s12  }
 0x50d   : > { %p10_p4 = scmp.ge.s32.totalorder %s13_s12, 10  }
 0x50f   :  { %12 = sbr.rel (!%p10_p4) target bundleno = 1 (0x1), region = 62 }

</bundles_post_ra>
